<compile_context>
chip_gen: v6e
topology: v6e:2x2x1
jax: 0.10.0
libtpu: 0.0.40
codegen_flags: <defaults>
</compile_context>

<pallas_src>
import math

import jax
import jax.numpy as jnp
from jax.experimental import pallas as pl
from jax.experimental.pallas import tpu as pltpu


def _encoder_kernel(ids_ref, emb_ref, wih_ref, whh_ref, bgi_ref, bhn_ref, out_ref):
    S, N, H = out_ref.shape
    V = emb_ref.shape[0]
    SN = S * N

    # ---------- pre-phase (batched over all timesteps, off the serial path) ----------
    # Fold Embedding + input projection:  emb(x) @ W_ih^T == onehot(x) @ (E @ W_ih^T)
    emb_proj = jnp.dot(emb_ref[...], wih_ref[...],
                       preferred_element_type=jnp.float32)                  # (V, 3H)
    ids = ids_ref[...]                                                      # (S*N, 1)
    onehot = (ids == jax.lax.broadcasted_iota(jnp.int32, (SN, V), 1)
              ).astype(jnp.float32)                                         # (S*N, V)
    # gi for every timestep, with combined r/z biases and b_in already added.
    gi_all = jnp.dot(onehot, emb_proj,
                     preferred_element_type=jnp.float32) + bgi_ref[...]     # (S*N, 3H)

    whh_t = whh_ref[...]                                                    # (H, 3H)
    bhn = bhn_ref[...]                                                      # (1, H)

    # ---------- recurrence: only h @ W_hh^T + gates per step ----------
    h = jnp.zeros((N, H), jnp.float32)
    for t in range(S):                       # S is small & static -> full unroll
        gi = gi_all[t * N:(t + 1) * N, :]                                   # (N, 3H)
        gh = jnp.dot(h, whh_t, preferred_element_type=jnp.float32)          # (N, 3H)
        r = jax.nn.sigmoid(gi[:, 0:H] + gh[:, 0:H])
        z = jax.nn.sigmoid(gi[:, H:2 * H] + gh[:, H:2 * H])
        n = jnp.tanh(gi[:, 2 * H:3 * H] + r * (gh[:, 2 * H:3 * H] + bhn))
        h = (1.0 - z) * n + z * h
        out_ref[t] = h.astype(out_ref.dtype)


def encoder_forward(x, emb_table, w_ih, w_hh, b_ih, b_hh):
    """x: (S, N) int ids. Weights in PyTorch layout:
       w_ih (3H, E), w_hh (3H, H), b_ih (3H,), b_hh (3H,).
       Returns (outputs (S,N,H), hidden (1,N,H)) like PyTorch Encoder(GRU)."""
    S, N = x.shape
    V, E = emb_table.shape
    H = w_hh.shape[1]

    emb_f32 = jnp.asarray(emb_table, jnp.float32)                 # (V, E)
    wih_t = jnp.asarray(w_ih, jnp.float32).T                      # (E, 3H)
    whh_t = jnp.asarray(w_hh, jnp.float32).T                      # (H, 3H)
    b_ih = jnp.asarray(b_ih, jnp.float32)
    b_hh = jnp.asarray(b_hh, jnp.float32)
    # r/z biases pre-summed; n-gate input bias kept here, n-gate hidden bias separate
    # (it must stay inside the r-multiplied term, matching PyTorch GRU semantics).
    bgi = jnp.concatenate([b_ih[:2 * H] + b_hh[:2 * H], b_ih[2 * H:]]).reshape(1, 3 * H)
    bhn = b_hh[2 * H:].reshape(1, H)
    ids = x.reshape(S * N, 1).astype(jnp.int32)

    outputs = pl.pallas_call(
        _encoder_kernel,
        out_shape=jax.ShapeDtypeStruct((S, N, H), jnp.float32),
        grid=(1,),  # single grid step: everything VMEM-resident, one writeback DMA
        in_specs=[
            pl.BlockSpec((S * N, 1), lambda i: (0, 0)),      # token ids
            pl.BlockSpec((V, E), lambda i: (0, 0)),          # embedding table
            pl.BlockSpec((E, 3 * H), lambda i: (0, 0)),      # W_ih^T
            pl.BlockSpec((H, 3 * H), lambda i: (0, 0)),      # W_hh^T
            pl.BlockSpec((1, 3 * H), lambda i: (0, 0)),      # combined input-side bias
            pl.BlockSpec((1, H), lambda i: (0, 0)),          # b_hn
        ],
        out_specs=pl.BlockSpec((S, N, H), lambda i: (0, 0, 0)),
        compiler_params=pltpu.CompilerParams(
            dimension_semantics=("arbitrary",),
        ),
    )(ids, emb_f32, wih_t, whh_t, bgi, bhn)

    hidden = outputs[-1:]                                    # (1, N, H) == final state
    return outputs, hidden


def _reference_encoder(x, emb_table, w_ih, w_hh, b_ih, b_hh):
    """Pure-JAX reference mirroring PyTorch Embedding + GRU (p=0)."""
    S, N = x.shape
    H = w_hh.shape[1]
    emb = jnp.take(emb_table, x, axis=0)                     # (S, N, E)

    def step(h, x_t):
        gi = x_t @ w_ih.T + b_ih
        gh = h @ w_hh.T + b_hh
        i_r, i_z, i_n = jnp.split(gi, 3, axis=-1)
        h_r, h_z, h_n = jnp.split(gh, 3, axis=-1)
        r = jax.nn.sigmoid(i_r + h_r)
        z = jax.nn.sigmoid(i_z + h_z)
        n = jnp.tanh(i_n + r * h_n)
        h_new = (1.0 - z) * n + z * h
        return h_new, h_new

    h0 = jnp.zeros((N, H), jnp.float32)
    h_T, outs = jax.lax.scan(step, h0, emb)
    return outs, h_T[None]


if __name__ == "__main__":
    # Small shapes consistent with the module's forward contract.
    input_size = 10       # vocab (english_char_count)
    embedding_size = 16
    hidden_size = 32
    seq_len = 8
    batch = 2

    key = jax.random.PRNGKey(0)
    k_x, k_emb, k_wih, k_whh, k_bih, k_bhh = jax.random.split(key, 6)

    x = jax.random.randint(k_x, (seq_len, batch), 0, input_size, dtype=jnp.int32)
    emb_table = jax.random.normal(k_emb, (input_size, embedding_size), jnp.float32)
    stdv = 1.0 / math.sqrt(hidden_size)
    w_ih = jax.random.uniform(k_wih, (3 * hidden_size, embedding_size),
                              jnp.float32, -stdv, stdv)
    w_hh = jax.random.uniform(k_whh, (3 * hidden_size, hidden_size),
                              jnp.float32, -stdv, stdv)
    b_ih = jax.random.uniform(k_bih, (3 * hidden_size,), jnp.float32, -stdv, stdv)
    b_hh = jax.random.uniform(k_bhh, (3 * hidden_size,), jnp.float32, -stdv, stdv)

    outputs, hidden = jax.jit(encoder_forward)(x, emb_table, w_ih, w_hh, b_ih, b_hh)
    jax.block_until_ready((outputs, hidden))

    assert outputs.shape == (seq_len, batch, hidden_size)
    assert hidden.shape == (1, batch, hidden_size)

    # correctness vs pure-JAX reference GRU
    ref_out, ref_hid = jax.jit(_reference_encoder)(x, emb_table, w_ih, w_hh, b_ih, b_hh)
    assert jnp.allclose(outputs, ref_out, atol=1e-4, rtol=1e-4)
    assert jnp.allclose(hidden, ref_hid, atol=1e-4, rtol=1e-4)
    # GRU semantics: last output timestep equals the returned hidden state
    assert jnp.allclose(outputs[-1], hidden[0], atol=1e-6)

    print("KERNEL_OK")
</pallas_src>

<mosaic_0001>
module attributes {stable_mosaic.version = 11 : i64} {
  func.func @_encoder_kernel(%arg0: i32, %arg1: memref<16x1xi32, #tpu.memory_space<vmem>>, %arg2: memref<10x16xf32, #tpu.memory_space<vmem>>, %arg3: memref<16x96xf32, #tpu.memory_space<vmem>>, %arg4: memref<32x96xf32, #tpu.memory_space<vmem>>, %arg5: memref<1x96xf32, #tpu.memory_space<vmem>>, %arg6: memref<1x32xf32, #tpu.memory_space<vmem>>, %arg7: memref<8x2x32xf32, #tpu.memory_space<vmem>>) attributes {dimension_semantics = [#tpu.dimension_semantics<arbitrary>], iteration_bounds = array<i64: 1>, scalar_prefetch = 0 : i64, scratch_operands = 0 : i64, tpu.core_type = #tpu.core_type<tc>, window_params = [{pipeline_mode = #tpu.pipeline_mode<synchronous>, transform_indices = @transform_0, window_bounds = array<i64: 16, 1>}, {pipeline_mode = #tpu.pipeline_mode<synchronous>, transform_indices = @transform_1, window_bounds = array<i64: 10, 16>}, {pipeline_mode = #tpu.pipeline_mode<synchronous>, transform_indices = @transform_2, window_bounds = array<i64: 16, 96>}, {pipeline_mode = #tpu.pipeline_mode<synchronous>, transform_indices = @transform_3, window_bounds = array<i64: 32, 96>}, {pipeline_mode = #tpu.pipeline_mode<synchronous>, transform_indices = @transform_4, window_bounds = array<i64: 1, 96>}, {pipeline_mode = #tpu.pipeline_mode<synchronous>, transform_indices = @transform_5, window_bounds = array<i64: 1, 32>}, {pipeline_mode = #tpu.pipeline_mode<synchronous>, transform_indices = @transform_6, window_bounds = array<i64: 8, 2, 32>}]} {
    %c0 = arith.constant 0 : index
    %c0_0 = arith.constant 0 : index
    %0 = vector.load %arg2[%c0, %c0_0] : memref<10x16xf32, #tpu.memory_space<vmem>>, vector<10x16xf32>
    %c0_1 = arith.constant 0 : index
    %c0_2 = arith.constant 0 : index
    %1 = vector.load %arg3[%c0_1, %c0_2] : memref<16x96xf32, #tpu.memory_space<vmem>>, vector<16x96xf32>
    %cst = arith.constant dense<0.000000e+00> : vector<10x96xf32>
    %2 = tpu.matmul %0, %1, %cst {dimension_numbers = #tpu.dot_dimension_numbers<[1], [0], [0], [1], [0, 0, 1, 1], [], []>} : vector<10x16xf32>, vector<16x96xf32>, vector<10x96xf32> -> vector<10x96xf32>
    %c0_3 = arith.constant 0 : index
    %c0_4 = arith.constant 0 : index
    %3 = vector.load %arg1[%c0_3, %c0_4] : memref<16x1xi32, #tpu.memory_space<vmem>>, vector<16x1xi32>
    %4 = tpu.iota {dimensions = array<i32: 1>} : vector<16x10xi32>
    %5 = vector.broadcast %3 : vector<16x1xi32> to vector<16x10xi32>
    %6 = arith.cmpi eq, %5, %4 : vector<16x10xi32>
    %7 = arith.extui %6 : vector<16x10xi1> to vector<16x10xi32>
    %8 = arith.sitofp %7 : vector<16x10xi32> to vector<16x10xf32>
    %cst_5 = arith.constant dense<0.000000e+00> : vector<16x96xf32>
    %9 = tpu.matmul %8, %2, %cst_5 {dimension_numbers = #tpu.dot_dimension_numbers<[1], [0], [0], [1], [0, 0, 1, 1], [], []>} : vector<16x10xf32>, vector<10x96xf32>, vector<16x96xf32> -> vector<16x96xf32>
    %c0_6 = arith.constant 0 : index
    %c0_7 = arith.constant 0 : index
    %10 = vector.load %arg5[%c0_6, %c0_7] : memref<1x96xf32, #tpu.memory_space<vmem>>, vector<1x96xf32>
    %11 = vector.broadcast %10 : vector<1x96xf32> to vector<16x96xf32>
    %12 = arith.addf %9, %11 : vector<16x96xf32>
    %c0_8 = arith.constant 0 : index
    %c0_9 = arith.constant 0 : index
    %13 = vector.load %arg4[%c0_8, %c0_9] : memref<32x96xf32, #tpu.memory_space<vmem>>, vector<32x96xf32>
    %c0_10 = arith.constant 0 : index
    %c0_11 = arith.constant 0 : index
    %14 = vector.load %arg6[%c0_10, %c0_11] : memref<1x32xf32, #tpu.memory_space<vmem>>, vector<1x32xf32>
    %cst_12 = arith.constant 0.000000e+00 : f32
    %15 = vector.broadcast %cst_12 : f32 to vector<2x32xf32>
    %16 = vector.extract_strided_slice %12 {offsets = [0, 0], sizes = [2, 96], strides = [1, 1]} : vector<16x96xf32> to vector<2x96xf32>
    %cst_13 = arith.constant dense<0.000000e+00> : vector<2x96xf32>
    %17 = tpu.matmul %15, %13, %cst_13 {dimension_numbers = #tpu.dot_dimension_numbers<[1], [0], [0], [1], [0, 0, 1, 1], [], []>} : vector<2x32xf32>, vector<32x96xf32>, vector<2x96xf32> -> vector<2x96xf32>
    %18 = vector.extract_strided_slice %16 {offsets = [0, 0], sizes = [2, 32], strides = [1, 1]} : vector<2x96xf32> to vector<2x32xf32>
    %19 = vector.extract_strided_slice %17 {offsets = [0, 0], sizes = [2, 32], strides = [1, 1]} : vector<2x96xf32> to vector<2x32xf32>
    %20 = arith.addf %18, %19 : vector<2x32xf32>
    %21 = arith.negf %20 : vector<2x32xf32>
    %22 = math.exp %21 : vector<2x32xf32>
    %cst_14 = arith.constant 1.000000e+00 : f32
    %23 = vector.broadcast %cst_14 : f32 to vector<2x32xf32>
    %24 = arith.addf %23, %22 : vector<2x32xf32>
    %25 = arith.divf %23, %24 : vector<2x32xf32>
    %26 = vector.extract_strided_slice %16 {offsets = [0, 32], sizes = [2, 32], strides = [1, 1]} : vector<2x96xf32> to vector<2x32xf32>
    %27 = vector.extract_strided_slice %17 {offsets = [0, 32], sizes = [2, 32], strides = [1, 1]} : vector<2x96xf32> to vector<2x32xf32>
    %28 = arith.addf %26, %27 : vector<2x32xf32>
    %29 = arith.negf %28 : vector<2x32xf32>
    %30 = math.exp %29 : vector<2x32xf32>
    %cst_15 = arith.constant 1.000000e+00 : f32
    %31 = vector.broadcast %cst_15 : f32 to vector<2x32xf32>
    %32 = arith.addf %31, %30 : vector<2x32xf32>
    %33 = arith.divf %31, %32 : vector<2x32xf32>
    %34 = vector.extract_strided_slice %16 {offsets = [0, 64], sizes = [2, 32], strides = [1, 1]} : vector<2x96xf32> to vector<2x32xf32>
    %35 = vector.extract_strided_slice %17 {offsets = [0, 64], sizes = [2, 32], strides = [1, 1]} : vector<2x96xf32> to vector<2x32xf32>
    %36 = vector.broadcast %14 : vector<1x32xf32> to vector<2x32xf32>
    %37 = arith.addf %35, %36 : vector<2x32xf32>
    %38 = arith.mulf %25, %37 : vector<2x32xf32>
    %39 = arith.addf %34, %38 : vector<2x32xf32>
    %40 = math.tanh %39 : vector<2x32xf32>
    %cst_16 = arith.constant 1.000000e+00 : f32
    %41 = vector.broadcast %cst_16 : f32 to vector<2x32xf32>
    %42 = arith.subf %41, %33 : vector<2x32xf32>
    %43 = arith.mulf %42, %40 : vector<2x32xf32>
    %44 = arith.mulf %33, %15 : vector<2x32xf32>
    %45 = arith.addf %43, %44 : vector<2x32xf32>
    %c0_17 = arith.constant 0 : index
    %c0_18 = arith.constant 0 : index
    %c0_19 = arith.constant 0 : index
    %46 = vector.load %arg7[%c0_17, %c0_18, %c0_19] : memref<8x2x32xf32, #tpu.memory_space<vmem>>, vector<1x2x32xf32>
    %47 = vector.shape_cast %46 : vector<1x2x32xf32> to vector<2x32xf32>
    %48 = vector.shape_cast %45 : vector<2x32xf32> to vector<1x2x32xf32>
    tpu.vector_store %arg7[%c0_17, %c0_18, %c0_19], %48 {strides = array<i32>} : memref<8x2x32xf32, #tpu.memory_space<vmem>>, vector<1x2x32xf32>,
    %49 = vector.extract_strided_slice %12 {offsets = [2, 0], sizes = [2, 96], strides = [1, 1]} : vector<16x96xf32> to vector<2x96xf32>
    %cst_20 = arith.constant dense<0.000000e+00> : vector<2x96xf32>
    %50 = tpu.matmul %45, %13, %cst_20 {dimension_numbers = #tpu.dot_dimension_numbers<[1], [0], [0], [1], [0, 0, 1, 1], [], []>} : vector<2x32xf32>, vector<32x96xf32>, vector<2x96xf32> -> vector<2x96xf32>
    %51 = vector.extract_strided_slice %49 {offsets = [0, 0], sizes = [2, 32], strides = [1, 1]} : vector<2x96xf32> to vector<2x32xf32>
    %52 = vector.extract_strided_slice %50 {offsets = [0, 0], sizes = [2, 32], strides = [1, 1]} : vector<2x96xf32> to vector<2x32xf32>
    %53 = arith.addf %51, %52 : vector<2x32xf32>
    %54 = arith.negf %53 : vector<2x32xf32>
    %55 = math.exp %54 : vector<2x32xf32>
    %cst_21 = arith.constant 1.000000e+00 : f32
    %56 = vector.broadcast %cst_21 : f32 to vector<2x32xf32>
    %57 = arith.addf %56, %55 : vector<2x32xf32>
    %58 = arith.divf %56, %57 : vector<2x32xf32>
    %59 = vector.extract_strided_slice %49 {offsets = [0, 32], sizes = [2, 32], strides = [1, 1]} : vector<2x96xf32> to vector<2x32xf32>
    %60 = vector.extract_strided_slice %50 {offsets = [0, 32], sizes = [2, 32], strides = [1, 1]} : vector<2x96xf32> to vector<2x32xf32>
    %61 = arith.addf %59, %60 : vector<2x32xf32>
    %62 = arith.negf %61 : vector<2x32xf32>
    %63 = math.exp %62 : vector<2x32xf32>
    %cst_22 = arith.constant 1.000000e+00 : f32
    %64 = vector.broadcast %cst_22 : f32 to vector<2x32xf32>
    %65 = arith.addf %64, %63 : vector<2x32xf32>
    %66 = arith.divf %64, %65 : vector<2x32xf32>
    %67 = vector.extract_strided_slice %49 {offsets = [0, 64], sizes = [2, 32], strides = [1, 1]} : vector<2x96xf32> to vector<2x32xf32>
    %68 = vector.extract_strided_slice %50 {offsets = [0, 64], sizes = [2, 32], strides = [1, 1]} : vector<2x96xf32> to vector<2x32xf32>
    %69 = vector.broadcast %14 : vector<1x32xf32> to vector<2x32xf32>
    %70 = arith.addf %68, %69 : vector<2x32xf32>
    %71 = arith.mulf %58, %70 : vector<2x32xf32>
    %72 = arith.addf %67, %71 : vector<2x32xf32>
    %73 = math.tanh %72 : vector<2x32xf32>
    %cst_23 = arith.constant 1.000000e+00 : f32
    %74 = vector.broadcast %cst_23 : f32 to vector<2x32xf32>
    %75 = arith.subf %74, %66 : vector<2x32xf32>
    %76 = arith.mulf %75, %73 : vector<2x32xf32>
    %77 = arith.mulf %66, %45 : vector<2x32xf32>
    %78 = arith.addf %76, %77 : vector<2x32xf32>
    %c1 = arith.constant 1 : index
    %c0_24 = arith.constant 0 : index
    %c0_25 = arith.constant 0 : index
    %79 = vector.load %arg7[%c1, %c0_24, %c0_25] : memref<8x2x32xf32, #tpu.memory_space<vmem>>, vector<1x2x32xf32>
    %80 = vector.shape_cast %79 : vector<1x2x32xf32> to vector<2x32xf32>
    %81 = vector.shape_cast %78 : vector<2x32xf32> to vector<1x2x32xf32>
    tpu.vector_store %arg7[%c1, %c0_24, %c0_25], %81 {strides = array<i32>} : memref<8x2x32xf32, #tpu.memory_space<vmem>>, vector<1x2x32xf32>,
    %82 = vector.extract_strided_slice %12 {offsets = [4, 0], sizes = [2, 96], strides = [1, 1]} : vector<16x96xf32> to vector<2x96xf32>
    %cst_26 = arith.constant dense<0.000000e+00> : vector<2x96xf32>
    %83 = tpu.matmul %78, %13, %cst_26 {dimension_numbers = #tpu.dot_dimension_numbers<[1], [0], [0], [1], [0, 0, 1, 1], [], []>} : vector<2x32xf32>, vector<32x96xf32>, vector<2x96xf32> -> vector<2x96xf32>
    %84 = vector.extract_strided_slice %82 {offsets = [0, 0], sizes = [2, 32], strides = [1, 1]} : vector<2x96xf32> to vector<2x32xf32>
    %85 = vector.extract_strided_slice %83 {offsets = [0, 0], sizes = [2, 32], strides = [1, 1]} : vector<2x96xf32> to vector<2x32xf32>
    %86 = arith.addf %84, %85 : vector<2x32xf32>
    %87 = arith.negf %86 : vector<2x32xf32>
    %88 = math.exp %87 : vector<2x32xf32>
    %cst_27 = arith.constant 1.000000e+00 : f32
    %89 = vector.broadcast %cst_27 : f32 to vector<2x32xf32>
    %90 = arith.addf %89, %88 : vector<2x32xf32>
    %91 = arith.divf %89, %90 : vector<2x32xf32>
    %92 = vector.extract_strided_slice %82 {offsets = [0, 32], sizes = [2, 32], strides = [1, 1]} : vector<2x96xf32> to vector<2x32xf32>
    %93 = vector.extract_strided_slice %83 {offsets = [0, 32], sizes = [2, 32], strides = [1, 1]} : vector<2x96xf32> to vector<2x32xf32>
    %94 = arith.addf %92, %93 : vector<2x32xf32>
    %95 = arith.negf %94 : vector<2x32xf32>
    %96 = math.exp %95 : vector<2x32xf32>
    %cst_28 = arith.constant 1.000000e+00 : f32
    %97 = vector.broadcast %cst_28 : f32 to vector<2x32xf32>
    %98 = arith.addf %97, %96 : vector<2x32xf32>
    %99 = arith.divf %97, %98 : vector<2x32xf32>
    %100 = vector.extract_strided_slice %82 {offsets = [0, 64], sizes = [2, 32], strides = [1, 1]} : vector<2x96xf32> to vector<2x32xf32>
    %101 = vector.extract_strided_slice %83 {offsets = [0, 64], sizes = [2, 32], strides = [1, 1]} : vector<2x96xf32> to vector<2x32xf32>
    %102 = vector.broadcast %14 : vector<1x32xf32> to vector<2x32xf32>
    %103 = arith.addf %101, %102 : vector<2x32xf32>
    %104 = arith.mulf %91, %103 : vector<2x32xf32>
    %105 = arith.addf %100, %104 : vector<2x32xf32>
    %106 = math.tanh %105 : vector<2x32xf32>
    %cst_29 = arith.constant 1.000000e+00 : f32
    %107 = vector.broadcast %cst_29 : f32 to vector<2x32xf32>
    %108 = arith.subf %107, %99 : vector<2x32xf32>
    %109 = arith.mulf %108, %106 : vector<2x32xf32>
    %110 = arith.mulf %99, %78 : vector<2x32xf32>
    %111 = arith.addf %109, %110 : vector<2x32xf32>
    %c2 = arith.constant 2 : index
    %c0_30 = arith.constant 0 : index
    %c0_31 = arith.constant 0 : index
    %112 = vector.load %arg7[%c2, %c0_30, %c0_31] : memref<8x2x32xf32, #tpu.memory_space<vmem>>, vector<1x2x32xf32>
    %113 = vector.shape_cast %112 : vector<1x2x32xf32> to vector<2x32xf32>
    %114 = vector.shape_cast %111 : vector<2x32xf32> to vector<1x2x32xf32>
    tpu.vector_store %arg7[%c2, %c0_30, %c0_31], %114 {strides = array<i32>} : memref<8x2x32xf32, #tpu.memory_space<vmem>>, vector<1x2x32xf32>,
    %115 = vector.extract_strided_slice %12 {offsets = [6, 0], sizes = [2, 96], strides = [1, 1]} : vector<16x96xf32> to vector<2x96xf32>
    %cst_32 = arith.constant dense<0.000000e+00> : vector<2x96xf32>
    %116 = tpu.matmul %111, %13, %cst_32 {dimension_numbers = #tpu.dot_dimension_numbers<[1], [0], [0], [1], [0, 0, 1, 1], [], []>} : vector<2x32xf32>, vector<32x96xf32>, vector<2x96xf32> -> vector<2x96xf32>
    %117 = vector.extract_strided_slice %115 {offsets = [0, 0], sizes = [2, 32], strides = [1, 1]} : vector<2x96xf32> to vector<2x32xf32>
    %118 = vector.extract_strided_slice %116 {offsets = [0, 0], sizes = [2, 32], strides = [1, 1]} : vector<2x96xf32> to vector<2x32xf32>
    %119 = arith.addf %117, %118 : vector<2x32xf32>
    %120 = arith.negf %119 : vector<2x32xf32>
    %121 = math.exp %120 : vector<2x32xf32>
    %cst_33 = arith.constant 1.000000e+00 : f32
    %122 = vector.broadcast %cst_33 : f32 to vector<2x32xf32>
    %123 = arith.addf %122, %121 : vector<2x32xf32>
    %124 = arith.divf %122, %123 : vector<2x32xf32>
    %125 = vector.extract_strided_slice %115 {offsets = [0, 32], sizes = [2, 32], strides = [1, 1]} : vector<2x96xf32> to vector<2x32xf32>
    %126 = vector.extract_strided_slice %116 {offsets = [0, 32], sizes = [2, 32], strides = [1, 1]} : vector<2x96xf32> to vector<2x32xf32>
    %127 = arith.addf %125, %126 : vector<2x32xf32>
    %128 = arith.negf %127 : vector<2x32xf32>
    %129 = math.exp %128 : vector<2x32xf32>
    %cst_34 = arith.constant 1.000000e+00 : f32
    %130 = vector.broadcast %cst_34 : f32 to vector<2x32xf32>
    %131 = arith.addf %130, %129 : vector<2x32xf32>
    %132 = arith.divf %130, %131 : vector<2x32xf32>
    %133 = vector.extract_strided_slice %115 {offsets = [0, 64], sizes = [2, 32], strides = [1, 1]} : vector<2x96xf32> to vector<2x32xf32>
    %134 = vector.extract_strided_slice %116 {offsets = [0, 64], sizes = [2, 32], strides = [1, 1]} : vector<2x96xf32> to vector<2x32xf32>
    %135 = vector.broadcast %14 : vector<1x32xf32> to vector<2x32xf32>
    %136 = arith.addf %134, %135 : vector<2x32xf32>
    %137 = arith.mulf %124, %136 : vector<2x32xf32>
    %138 = arith.addf %133, %137 : vector<2x32xf32>
    %139 = math.tanh %138 : vector<2x32xf32>
    %cst_35 = arith.constant 1.000000e+00 : f32
    %140 = vector.broadcast %cst_35 : f32 to vector<2x32xf32>
    %141 = arith.subf %140, %132 : vector<2x32xf32>
    %142 = arith.mulf %141, %139 : vector<2x32xf32>
    %143 = arith.mulf %132, %111 : vector<2x32xf32>
    %144 = arith.addf %142, %143 : vector<2x32xf32>
    %c3 = arith.constant 3 : index
    %c0_36 = arith.constant 0 : index
    %c0_37 = arith.constant 0 : index
    %145 = vector.load %arg7[%c3, %c0_36, %c0_37] : memref<8x2x32xf32, #tpu.memory_space<vmem>>, vector<1x2x32xf32>
    %146 = vector.shape_cast %145 : vector<1x2x32xf32> to vector<2x32xf32>
    %147 = vector.shape_cast %144 : vector<2x32xf32> to vector<1x2x32xf32>
    tpu.vector_store %arg7[%c3, %c0_36, %c0_37], %147 {strides = array<i32>} : memref<8x2x32xf32, #tpu.memory_space<vmem>>, vector<1x2x32xf32>,
    %148 = vector.extract_strided_slice %12 {offsets = [8, 0], sizes = [2, 96], strides = [1, 1]} : vector<16x96xf32> to vector<2x96xf32>
    %cst_38 = arith.constant dense<0.000000e+00> : vector<2x96xf32>
    %149 = tpu.matmul %144, %13, %cst_38 {dimension_numbers = #tpu.dot_dimension_numbers<[1], [0], [0], [1], [0, 0, 1, 1], [], []>} : vector<2x32xf32>, vector<32x96xf32>, vector<2x96xf32> -> vector<2x96xf32>
    %150 = vector.extract_strided_slice %148 {offsets = [0, 0], sizes = [2, 32], strides = [1, 1]} : vector<2x96xf32> to vector<2x32xf32>
    %151 = vector.extract_strided_slice %149 {offsets = [0, 0], sizes = [2, 32], strides = [1, 1]} : vector<2x96xf32> to vector<2x32xf32>
    %152 = arith.addf %150, %151 : vector<2x32xf32>
    %153 = arith.negf %152 : vector<2x32xf32>
    %154 = math.exp %153 : vector<2x32xf32>
    %cst_39 = arith.constant 1.000000e+00 : f32
    %155 = vector.broadcast %cst_39 : f32 to vector<2x32xf32>
    %156 = arith.addf %155, %154 : vector<2x32xf32>
    %157 = arith.divf %155, %156 : vector<2x32xf32>
    %158 = vector.extract_strided_slice %148 {offsets = [0, 32], sizes = [2, 32], strides = [1, 1]} : vector<2x96xf32> to vector<2x32xf32>
    %159 = vector.extract_strided_slice %149 {offsets = [0, 32], sizes = [2, 32], strides = [1, 1]} : vector<2x96xf32> to vector<2x32xf32>
    %160 = arith.addf %158, %159 : vector<2x32xf32>
    %161 = arith.negf %160 : vector<2x32xf32>
    %162 = math.exp %161 : vector<2x32xf32>
    %cst_40 = arith.constant 1.000000e+00 : f32
    %163 = vector.broadcast %cst_40 : f32 to vector<2x32xf32>
    %164 = arith.addf %163, %162 : vector<2x32xf32>
    %165 = arith.divf %163, %164 : vector<2x32xf32>
    %166 = vector.extract_strided_slice %148 {offsets = [0, 64], sizes = [2, 32], strides = [1, 1]} : vector<2x96xf32> to vector<2x32xf32>
    %167 = vector.extract_strided_slice %149 {offsets = [0, 64], sizes = [2, 32], strides = [1, 1]} : vector<2x96xf32> to vector<2x32xf32>
    %168 = vector.broadcast %14 : vector<1x32xf32> to vector<2x32xf32>
    %169 = arith.addf %167, %168 : vector<2x32xf32>
    %170 = arith.mulf %157, %169 : vector<2x32xf32>
    %171 = arith.addf %166, %170 : vector<2x32xf32>
    %172 = math.tanh %171 : vector<2x32xf32>
    %cst_41 = arith.constant 1.000000e+00 : f32
    %173 = vector.broadcast %cst_41 : f32 to vector<2x32xf32>
    %174 = arith.subf %173, %165 : vector<2x32xf32>
    %175 = arith.mulf %174, %172 : vector<2x32xf32>
    %176 = arith.mulf %165, %144 : vector<2x32xf32>
    %177 = arith.addf %175, %176 : vector<2x32xf32>
    %c4 = arith.constant 4 : index
    %c0_42 = arith.constant 0 : index
    %c0_43 = arith.constant 0 : index
    %178 = vector.load %arg7[%c4, %c0_42, %c0_43] : memref<8x2x32xf32, #tpu.memory_space<vmem>>, vector<1x2x32xf32>
    %179 = vector.shape_cast %178 : vector<1x2x32xf32> to vector<2x32xf32>
    %180 = vector.shape_cast %177 : vector<2x32xf32> to vector<1x2x32xf32>
    tpu.vector_store %arg7[%c4, %c0_42, %c0_43], %180 {strides = array<i32>} : memref<8x2x32xf32, #tpu.memory_space<vmem>>, vector<1x2x32xf32>,
    %181 = vector.extract_strided_slice %12 {offsets = [10, 0], sizes = [2, 96], strides = [1, 1]} : vector<16x96xf32> to vector<2x96xf32>
    %cst_44 = arith.constant dense<0.000000e+00> : vector<2x96xf32>
    %182 = tpu.matmul %177, %13, %cst_44 {dimension_numbers = #tpu.dot_dimension_numbers<[1], [0], [0], [1], [0, 0, 1, 1], [], []>} : vector<2x32xf32>, vector<32x96xf32>, vector<2x96xf32> -> vector<2x96xf32>
    %183 = vector.extract_strided_slice %181 {offsets = [0, 0], sizes = [2, 32], strides = [1, 1]} : vector<2x96xf32> to vector<2x32xf32>
    %184 = vector.extract_strided_slice %182 {offsets = [0, 0], sizes = [2, 32], strides = [1, 1]} : vector<2x96xf32> to vector<2x32xf32>
    %185 = arith.addf %183, %184 : vector<2x32xf32>
    %186 = arith.negf %185 : vector<2x32xf32>
    %187 = math.exp %186 : vector<2x32xf32>
    %cst_45 = arith.constant 1.000000e+00 : f32
    %188 = vector.broadcast %cst_45 : f32 to vector<2x32xf32>
    %189 = arith.addf %188, %187 : vector<2x32xf32>
    %190 = arith.divf %188, %189 : vector<2x32xf32>
    %191 = vector.extract_strided_slice %181 {offsets = [0, 32], sizes = [2, 32], strides = [1, 1]} : vector<2x96xf32> to vector<2x32xf32>
    %192 = vector.extract_strided_slice %182 {offsets = [0, 32], sizes = [2, 32], strides = [1, 1]} : vector<2x96xf32> to vector<2x32xf32>
    %193 = arith.addf %191, %192 : vector<2x32xf32>
    %194 = arith.negf %193 : vector<2x32xf32>
    %195 = math.exp %194 : vector<2x32xf32>
    %cst_46 = arith.constant 1.000000e+00 : f32
    %196 = vector.broadcast %cst_46 : f32 to vector<2x32xf32>
    %197 = arith.addf %196, %195 : vector<2x32xf32>
    %198 = arith.divf %196, %197 : vector<2x32xf32>
    %199 = vector.extract_strided_slice %181 {offsets = [0, 64], sizes = [2, 32], strides = [1, 1]} : vector<2x96xf32> to vector<2x32xf32>
    %200 = vector.extract_strided_slice %182 {offsets = [0, 64], sizes = [2, 32], strides = [1, 1]} : vector<2x96xf32> to vector<2x32xf32>
    %201 = vector.broadcast %14 : vector<1x32xf32> to vector<2x32xf32>
    %202 = arith.addf %200, %201 : vector<2x32xf32>
    %203 = arith.mulf %190, %202 : vector<2x32xf32>
    %204 = arith.addf %199, %203 : vector<2x32xf32>
    %205 = math.tanh %204 : vector<2x32xf32>
    %cst_47 = arith.constant 1.000000e+00 : f32
    %206 = vector.broadcast %cst_47 : f32 to vector<2x32xf32>
    %207 = arith.subf %206, %198 : vector<2x32xf32>
    %208 = arith.mulf %207, %205 : vector<2x32xf32>
    %209 = arith.mulf %198, %177 : vector<2x32xf32>
    %210 = arith.addf %208, %209 : vector<2x32xf32>
    %c5 = arith.constant 5 : index
    %c0_48 = arith.constant 0 : index
    %c0_49 = arith.constant 0 : index
    %211 = vector.load %arg7[%c5, %c0_48, %c0_49] : memref<8x2x32xf32, #tpu.memory_space<vmem>>, vector<1x2x32xf32>
    %212 = vector.shape_cast %211 : vector<1x2x32xf32> to vector<2x32xf32>
    %213 = vector.shape_cast %210 : vector<2x32xf32> to vector<1x2x32xf32>
    tpu.vector_store %arg7[%c5, %c0_48, %c0_49], %213 {strides = array<i32>} : memref<8x2x32xf32, #tpu.memory_space<vmem>>, vector<1x2x32xf32>,
    %214 = vector.extract_strided_slice %12 {offsets = [12, 0], sizes = [2, 96], strides = [1, 1]} : vector<16x96xf32> to vector<2x96xf32>
    %cst_50 = arith.constant dense<0.000000e+00> : vector<2x96xf32>
    %215 = tpu.matmul %210, %13, %cst_50 {dimension_numbers = #tpu.dot_dimension_numbers<[1], [0], [0], [1], [0, 0, 1, 1], [], []>} : vector<2x32xf32>, vector<32x96xf32>, vector<2x96xf32> -> vector<2x96xf32>
    %216 = vector.extract_strided_slice %214 {offsets = [0, 0], sizes = [2, 32], strides = [1, 1]} : vector<2x96xf32> to vector<2x32xf32>
    %217 = vector.extract_strided_slice %215 {offsets = [0, 0], sizes = [2, 32], strides = [1, 1]} : vector<2x96xf32> to vector<2x32xf32>
    %218 = arith.addf %216, %217 : vector<2x32xf32>
    %219 = arith.negf %218 : vector<2x32xf32>
    %220 = math.exp %219 : vector<2x32xf32>
    %cst_51 = arith.constant 1.000000e+00 : f32
    %221 = vector.broadcast %cst_51 : f32 to vector<2x32xf32>
    %222 = arith.addf %221, %220 : vector<2x32xf32>
    %223 = arith.divf %221, %222 : vector<2x32xf32>
    %224 = vector.extract_strided_slice %214 {offsets = [0, 32], sizes = [2, 32], strides = [1, 1]} : vector<2x96xf32> to vector<2x32xf32>
    %225 = vector.extract_strided_slice %215 {offsets = [0, 32], sizes = [2, 32], strides = [1, 1]} : vector<2x96xf32> to vector<2x32xf32>
    %226 = arith.addf %224, %225 : vector<2x32xf32>
    %227 = arith.negf %226 : vector<2x32xf32>
    %228 = math.exp %227 : vector<2x32xf32>
    %cst_52 = arith.constant 1.000000e+00 : f32
    %229 = vector.broadcast %cst_52 : f32 to vector<2x32xf32>
    %230 = arith.addf %229, %228 : vector<2x32xf32>
    %231 = arith.divf %229, %230 : vector<2x32xf32>
    %232 = vector.extract_strided_slice %214 {offsets = [0, 64], sizes = [2, 32], strides = [1, 1]} : vector<2x96xf32> to vector<2x32xf32>
    %233 = vector.extract_strided_slice %215 {offsets = [0, 64], sizes = [2, 32], strides = [1, 1]} : vector<2x96xf32> to vector<2x32xf32>
    %234 = vector.broadcast %14 : vector<1x32xf32> to vector<2x32xf32>
    %235 = arith.addf %233, %234 : vector<2x32xf32>
    %236 = arith.mulf %223, %235 : vector<2x32xf32>
    %237 = arith.addf %232, %236 : vector<2x32xf32>
    %238 = math.tanh %237 : vector<2x32xf32>
    %cst_53 = arith.constant 1.000000e+00 : f32
    %239 = vector.broadcast %cst_53 : f32 to vector<2x32xf32>
    %240 = arith.subf %239, %231 : vector<2x32xf32>
    %241 = arith.mulf %240, %238 : vector<2x32xf32>
    %242 = arith.mulf %231, %210 : vector<2x32xf32>
    %243 = arith.addf %241, %242 : vector<2x32xf32>
    %c6 = arith.constant 6 : index
    %c0_54 = arith.constant 0 : index
    %c0_55 = arith.constant 0 : index
    %244 = vector.load %arg7[%c6, %c0_54, %c0_55] : memref<8x2x32xf32, #tpu.memory_space<vmem>>, vector<1x2x32xf32>
    %245 = vector.shape_cast %244 : vector<1x2x32xf32> to vector<2x32xf32>
    %246 = vector.shape_cast %243 : vector<2x32xf32> to vector<1x2x32xf32>
    tpu.vector_store %arg7[%c6, %c0_54, %c0_55], %246 {strides = array<i32>} : memref<8x2x32xf32, #tpu.memory_space<vmem>>, vector<1x2x32xf32>,
    %247 = vector.extract_strided_slice %12 {offsets = [14, 0], sizes = [2, 96], strides = [1, 1]} : vector<16x96xf32> to vector<2x96xf32>
    %cst_56 = arith.constant dense<0.000000e+00> : vector<2x96xf32>
    %248 = tpu.matmul %243, %13, %cst_56 {dimension_numbers = #tpu.dot_dimension_numbers<[1], [0], [0], [1], [0, 0, 1, 1], [], []>} : vector<2x32xf32>, vector<32x96xf32>, vector<2x96xf32> -> vector<2x96xf32>
    %249 = vector.extract_strided_slice %247 {offsets = [0, 0], sizes = [2, 32], strides = [1, 1]} : vector<2x96xf32> to vector<2x32xf32>
    %250 = vector.extract_strided_slice %248 {offsets = [0, 0], sizes = [2, 32], strides = [1, 1]} : vector<2x96xf32> to vector<2x32xf32>
    %251 = arith.addf %249, %250 : vector<2x32xf32>
    %252 = arith.negf %251 : vector<2x32xf32>
    %253 = math.exp %252 : vector<2x32xf32>
    %cst_57 = arith.constant 1.000000e+00 : f32
    %254 = vector.broadcast %cst_57 : f32 to vector<2x32xf32>
    %255 = arith.addf %254, %253 : vector<2x32xf32>
    %256 = arith.divf %254, %255 : vector<2x32xf32>
    %257 = vector.extract_strided_slice %247 {offsets = [0, 32], sizes = [2, 32], strides = [1, 1]} : vector<2x96xf32> to vector<2x32xf32>
    %258 = vector.extract_strided_slice %248 {offsets = [0, 32], sizes = [2, 32], strides = [1, 1]} : vector<2x96xf32> to vector<2x32xf32>
    %259 = arith.addf %257, %258 : vector<2x32xf32>
    %260 = arith.negf %259 : vector<2x32xf32>
    %261 = math.exp %260 : vector<2x32xf32>
    %cst_58 = arith.constant 1.000000e+00 : f32
    %262 = vector.broadcast %cst_58 : f32 to vector<2x32xf32>
    %263 = arith.addf %262, %261 : vector<2x32xf32>
    %264 = arith.divf %262, %263 : vector<2x32xf32>
    %265 = vector.extract_strided_slice %247 {offsets = [0, 64], sizes = [2, 32], strides = [1, 1]} : vector<2x96xf32> to vector<2x32xf32>
    %266 = vector.extract_strided_slice %248 {offsets = [0, 64], sizes = [2, 32], strides = [1, 1]} : vector<2x96xf32> to vector<2x32xf32>
    %267 = vector.broadcast %14 : vector<1x32xf32> to vector<2x32xf32>
    %268 = arith.addf %266, %267 : vector<2x32xf32>
    %269 = arith.mulf %256, %268 : vector<2x32xf32>
    %270 = arith.addf %265, %269 : vector<2x32xf32>
    %271 = math.tanh %270 : vector<2x32xf32>
    %cst_59 = arith.constant 1.000000e+00 : f32
    %272 = vector.broadcast %cst_59 : f32 to vector<2x32xf32>
    %273 = arith.subf %272, %264 : vector<2x32xf32>
    %274 = arith.mulf %273, %271 : vector<2x32xf32>
    %275 = arith.mulf %264, %243 : vector<2x32xf32>
    %276 = arith.addf %274, %275 : vector<2x32xf32>
    %c7 = arith.constant 7 : index
    %c0_60 = arith.constant 0 : index
    %c0_61 = arith.constant 0 : index
    %277 = vector.load %arg7[%c7, %c0_60, %c0_61] : memref<8x2x32xf32, #tpu.memory_space<vmem>>, vector<1x2x32xf32>
    %278 = vector.shape_cast %277 : vector<1x2x32xf32> to vector<2x32xf32>
    %279 = vector.shape_cast %276 : vector<2x32xf32> to vector<1x2x32xf32>
    tpu.vector_store %arg7[%c7, %c0_60, %c0_61], %279 {strides = array<i32>} : memref<8x2x32xf32, #tpu.memory_space<vmem>>, vector<1x2x32xf32>,
    return
  }
  func.func @transform_0(%arg0: i32) -> (i32, i32) {
    %c0_i32 = arith.constant 0 : i32
    %c0_i32_0 = arith.constant 0 : i32
    %c0_i32_1 = arith.constant 0 : i32
    return %c0_i32, %c0_i32_0 : i32, i32
  }
  func.func @transform_1(%arg0: i32) -> (i32, i32) {
    %c0_i32 = arith.constant 0 : i32
    %c0_i32_0 = arith.constant 0 : i32
    %c0_i32_1 = arith.constant 0 : i32
    return %c0_i32, %c0_i32_0 : i32, i32
  }
  func.func @transform_2(%arg0: i32) -> (i32, i32) {
    %c0_i32 = arith.constant 0 : i32
    %c0_i32_0 = arith.constant 0 : i32
    %c0_i32_1 = arith.constant 0 : i32
    return %c0_i32, %c0_i32_0 : i32, i32
  }
  func.func @transform_3(%arg0: i32) -> (i32, i32) {
    %c0_i32 = arith.constant 0 : i32
    %c0_i32_0 = arith.constant 0 : i32
    %c0_i32_1 = arith.constant 0 : i32
    return %c0_i32, %c0_i32_0 : i32, i32
  }
  func.func @transform_4(%arg0: i32) -> (i32, i32) {
    %c0_i32 = arith.constant 0 : i32
    %c0_i32_0 = arith.constant 0 : i32
    %c0_i32_1 = arith.constant 0 : i32
    return %c0_i32, %c0_i32_0 : i32, i32
  }
  func.func @transform_5(%arg0: i32) -> (i32, i32) {
    %c0_i32 = arith.constant 0 : i32
    %c0_i32_0 = arith.constant 0 : i32
    %c0_i32_1 = arith.constant 0 : i32
    return %c0_i32, %c0_i32_0 : i32, i32
  }
  func.func @transform_6(%arg0: i32) -> (i32, i32, i32) {
    %c0_i32 = arith.constant 0 : i32
    %c0_i32_0 = arith.constant 0 : i32
    %c0_i32_1 = arith.constant 0 : i32
    %c0_i32_2 = arith.constant 0 : i32
    return %c0_i32, %c0_i32_0, %c0_i32_1 : i32, i32, i32
  }
}

</mosaic_0001>

<bundles_post_ra>
// kernel: encoder_forward.1
= control target key start
LH: loop header
LB: loop body
LE: loop exit
PB: predicated region body
PF: predicated region fallthrough
CT: control target
= control target key end

     0   :  { %11 = vsyncpa [#allocation3], 0  ;;  %s1407_s21 = smov [#allocation2]   ;;  %s1698_s0 = inlined_call_operand.vmem [shape: s32[16,1], index: 0, kind: input, shape index: {}]   ;;  %s1699_s1 = inlined_call_operand.vmem [shape: f32[10,16], index: 1, kind: input, shape index: {}]   ;;  %s1700_s2 = inlined_call_operand.hbm [shape: f32[16,96], index: 2, kind: input, shape index: {}]   ;;  %s1701_s3 = inlined_call_operand.vmem [shape: f32[32,96], index: 3, kind: input, shape index: {}]   ;;  %s1702_s4 = inlined_call_operand.vmem [shape: f32[1,96], index: 4, kind: input, shape index: {}]   ;;  %s1703_s5 = inlined_call_operand.vmem [shape: f32[1,32], index: 5, kind: input, shape index: {}]   ;;  %s1704_s6 = inlined_call_operand.vmem [shape: f32[8,2,32], index: 6, kind: output, shape index: {}]  }
   0x1   :  { %s21_s22 = sshll.u32 %s1407_s21, 4  ;;  %s22_s22 = int_to_ptr.vmem [resolvable:$true] %s21_s22 }
   0x2   :  { %s1393_s23 = scalar_lea.vmem %s22_s22, 256  ;;  %p1398_p1 = scmp.lt.s32.totalorder %s22_s22, %s22_s22 }
   0x3   :  { %p1394_p0 = scmp.ne.s32.totalorder %s22_s22, %s1393_s23  ;;  %p1399_p2 = scmp.lt.s32.totalorder %s1393_s23, %s1393_s23 }
   0x5   :  { %p1400_p3 = por %p1399_p2, %p1398_p1 }
   0x7   :  { %p1401_p4 = pnand %p1400_p3, %p1394_p0 }
   0x9   :  { %1404 = shalt.err (!%p1401_p4)
}
   0xa   :  { %s1408_s24 = smov 128   ;;  %s1409_s25 = smov 8  }
   0xb   :  { %27 = dma.hbm_to_vmem [thread:$0]  %s1700_s2, 256, %s22_s22, [#allocation3], %s1408_s24, %s1408_s24, %s1409_s25  }
   0xc   :  { %1405 = dma.done.wait [#allocation3], 256  }
   0xd   :  { %1406 = vsyncadd [#allocation3], 4294967040  ;;  %v1410_v0 = vmov 0   ;;  %vm41_vm0 = vcmask 130048   ;;  %v40_v1 = vld [vmem:[#allocation2 + $0x8] sm:$0xff]  ;;  %v39_v2 = vld [vmem:[#allocation2] sm:$0xff]  ;;  %v125_v13 = vlaneseq }
   0xe   :  { %1336 = vset.pattern.permute.xlu0 %v1410_v0  ;;  %v37_v3 = vld [vmem:[%s1699_s1] sm:$0xff]  ;;  %1226 = vmatprep.subr.mxu0 %v40_v1  ;;  %v38_v5 = vld [vmem:[%s1699_s1 + $0x8] sm:$0x3]  ;;  %v1468_v7 = vld [vmem:[%s1701_s3 + $0x18] sm:$0xff]  ;;  %v1411_v8 = vmov 0.0   ;;  %vm1412_vm1 = vmmov 0  }
   0xf   :  { %1230 = vmatprep.mubr.msk.f32.mxu0 %vm41_vm0, %v37_v3  ;;  %v123_v4 = vld [vmem:[%s1698_s0] sm:$0xff]  ;;  %1227 = vmatpush3.msra.mxu0 %v40_v1  ;;  %v124_v6 = vld [vmem:[%s1698_s0 + $0x8] sm:$0xff]  ;;  %v1474_v9 = vld [vmem:[%s1701_s3 + $0x10] sm:$0xff]  ;;  %s1413_s18 = smov 64   ;;  %v126_v14 = vand.u32 127, %v125_v13  ;;  %vm146_vm2 = vcmask 80896  }
  0x10   :  { %128 = vperm.xlu0 %1336, %v123_v4   ;;  %1228 = vmatprep.subr.mxu0 %v39_v2  ;;  %v1481_v10 = vld [vmem:[%s1701_s3 + $0x8] sm:$0xff]  ;;  %v1490_v11 = vld [vmem:[%s1701_s3] sm:$0xff]  ;;  %vm153_vm4 = vcmask 1041408   ;;  %vm350_vm6 = vcmask 254976   ;;  %vm237_vm7 = vcmask 261120   ;;  %vm462_vm8 = vcmask 257026  }
  0x11   :  { %1229 = vmatpush3.msra.mxu0 %v39_v2  ;;  %v1156_v12 = vld [vmem:[%s1703_s5] ss:$0 sm:$0xff]  ;;  %vm692_vm9 = vcmask 261126   ;;  %vm577_vm10 = vcmask 259076  }
  0x12   :  { %1231 = vmatmul.mubr.msk.f32.vlgmr.msra.gmra.mxu0 %vm41_vm0, %v38_v5  ;;  %1240 = vmatprep.subr.mxu0 %v1411_v8  ;;  %v1151_v25 = vld [vmem:[%s1702_s4] ss:$0 sm:$0xff]  ;;  %s1414_s4 = smov 96  }
  0x13   :  { %1241 = vmatpush3.msra.mxu0 %v1468_v7  ;;  %1248 = vmatprep.mubr.msk.f32.mxu0 %vm1412_vm1, %v1411_v8 }
  0x14   :  { %131 = vperm.xlu0 %1336, %v124_v6   ;;  %1242 = vmatprep.subr.mxu0 %v1411_v8 }
  0x15   :  { %1243 = vmatpush3.msra.mxu0 %v1474_v9  ;;  %323 = vrot.lane.b32.xlu1 %v1156_v12, %s1413_s18 }
  0x16   :  { %1244 = vmatprep.subr.mxu0 %v1411_v8 }
  0x17   :  { %1245 = vmatpush3.msra.mxu0 %v1481_v10 }
  0x18   :  { %1246 = vmatprep.subr.mxu0 %v1411_v8 }
  0x19   :  { %1247 = vmatpush3.msra.mxu0 %v1490_v11 }
  0x1a   :  { %1249 = vmatmul.mubr.f32.vlgmr.msra.gmra.mxu0 %v1411_v8  ;;  %1262 = vmatprep.subr.mxu0 %v1411_v8 }
  0x1b   :  { %1263 = vmatpush3.msra.mxu0 %v1468_v7  ;;  %1270 = vmatprep.mubr.msk.f32.mxu0 %vm1412_vm1, %v1411_v8 }
  0x1c   :  { %1264 = vmatprep.subr.mxu0 %v1411_v8 }
  0x1d   :  { %1265 = vmatpush3.msra.mxu0 %v1474_v9 }
  0x1e   :  { %1266 = vmatprep.subr.mxu0 %v1411_v8 }
  0x1f   :  { %1267 = vmatpush3.msra.mxu0 %v1481_v10 }
  0x20   :  { %1268 = vmatprep.subr.mxu0 %v1411_v8 }
  0x21   :  { %1269 = vmatpush3.msra.mxu0 %v1490_v11 }
  0x22   :  { %1284 = vmatprep.subr.mxu0 %v1411_v8 }
  0x87   :  { %v1514_v21 = vpop.permute.xlu1 %323 }
  0x8b   :  { %v129_v15 = vpop.permute.xlu0 %128 }
  0x8c   :  { %vm133_vm3 = vcmp.eq.s32.totalorder %v129_v15, %v126_v14 }
  0x8d   :  { %v1149_v16 = vsel %vm133_vm3, 1.0, %v1411_v8 }
  0x8e   :  { %1237 = vmatprep.mubr.msk.f32.mxu1 %vm146_vm2, %v1149_v16 }
  0x8f   :  { %v132_v17 = vpop.permute.xlu0 %131 }
  0x90   :  { %vm134_vm5 = vcmp.eq.s32.totalorder %v132_v17, %v126_v14 }
  0x91   :  { %v1150_v20 = vsel %vm134_vm5, 1.0, %v1411_v8 }
  0xd2   :  { %v1232_v18 = vpop.f32.mrf.mxu0 }
  0xd3   :  { %1233 = vmatprep.subr.msk.mxu1 %vm153_vm4, %v1232_v18 }
  0xd4   :  { %v114_v19 = vpop.f32.mrf.mxu0  ;;  %1234 = vmatpush3.msk.msra.mxu1 %vm153_vm4, %v1232_v18 }
  0xd5   :  { %1235 = vmatprep.subr.mxu1 %v114_v19 }
  0xd6   :  { %1236 = vmatpush3.msra.mxu1 %v114_v19 }
  0xd7   :  { %1238 = vmatmul.mubr.msk.f32.vlgmr.msra.gmra.mxu1 %vm146_vm2, %v1150_v20  ;;  %1251 = vmatprep.subr.mxu1 %v1411_v8 }
  0xd8   :  { %1252 = vmatpush3.msra.mxu1 %v1468_v7  ;;  %1259 = vmatprep.mubr.msk.f32.mxu1 %vm1412_vm1, %v1411_v8 }
  0xd9   :  { %1253 = vmatprep.subr.mxu1 %v1411_v8 }
  0xda   :  { %v307_v22 = vpop.f32.mrf.mxu0  ;;  %1254 = vmatpush3.msra.mxu1 %v1474_v9 }
  0xdb   :  { %v326_v23 = vadd.f32 %v1514_v21, %v307_v22  ;;  %1255 = vmatprep.subr.mxu1 %v1411_v8 }
  0xdc   :  { %v1250_v24 = vpop.f32.mrf.mxu0  ;;  %1256 = vmatpush3.msra.mxu1 %v1481_v10 }
  0xdd   :  { %328 = vrot.lane.b32.xlu1 %v326_v23, %s1413_s18  ;;  %1257 = vmatprep.subr.mxu1 %v1411_v8 }
  0xde   :  { %1258 = vmatpush3.msra.mxu1 %v1490_v11 }
  0xdf   :  { %1273 = vmatprep.subr.mxu1 %v1411_v8 }
 0x14f   :  { %v329_v34 = vpop.permute.xlu1 %328 }
 0x197   :  { %v1239_v26 = vpop.f32.mrf.mxu1 }
 0x198   :  { %v1531_v27 = vadd.f32 %v1239_v26, %v1151_v25 }
 0x199   :  { %v223_v28 = vpop.f32.mrf.mxu1 }
 0x19a   :  { %v1533_v29 = vadd.f32 %v1151_v25, %v223_v28 }
 0x19c   :  { %v311_v30 = vadd.f32 %v307_v22, %v1533_v29 }
 0x19e   :  { %v1155_v31 = vmul.f32 -1.442695, %v311_v30 }
 0x1a0   :  { %1337 = vpow2.f32 %v1155_v31 }
 0x1ad   :  { %v1338_v32 = vpop.eup %1337 }
 0x1ae   :  { %v315_v33 = vadd.f32 1.0, %v1338_v32 }
 0x1b0   :  { %1339 = vrcp.f32 %v315_v33 }
 0x1bd   :  { %v1340_v35 = vpop.eup %1339 }
 0x1be   :  { %v331_v36 = vmul.f32 %v1340_v35, %v329_v34  ;;  %v338_v40 = vsub.f32 1.0, %v1340_v35  ;;  %v344_v42 = vmul.f32 0.0, %v1340_v35 }
 0x1c0   :  { %333 = vrot.lane.b32.xlu0 %v331_v36, %s1413_s18 }
 0x232   :  { %v334_v37 = vpop.permute.xlu0 %333 }
 0x233   :  { %v336_v38 = vadd.f32 %v334_v37, %v1533_v29 }
 0x235   :  { %1341 = vtanh.f32 %v336_v38 }
 0x242   :  { %v1342_v39 = vpop.eup %1341 }
 0x243   :  { %340 = vrot.lane.b32.xlu1 %v1342_v39, %s1414_s4 }
 0x2b5   :  { %v341_v41 = vpop.permute.xlu1 %340 }
 0x2b6   :  { %v343_v43 = vmul.f32 %v341_v41, %v338_v40 }
 0x2b8   :  { %v345_v44 = vadd.f32 %v344_v42, %v343_v43 }
 0x2ba   :  { %347 = vrot.lane.b32.xlu0 %v345_v44, %s1414_s4  ;;  %v453_v61 = vrot.slane %v345_v44, 6 }
 0x32c   :  { %v348_v45 = vpop.permute.xlu0 %347 }
 0x32d   :  { %351 = vst.msk [vmem:[%s1704_s6] sm:$0x3] %vm350_vm6, %v348_v45  ;;  %1260 = vmatmul.mubr.msk.f32.vlgmr.msra.gmra.mxu1 %vm237_vm7, %v348_v45 }
 0x32e   :  { %1274 = vmatpush3.msra.mxu1 %v1468_v7  ;;  %1281 = vmatprep.mubr.msk.f32.mxu1 %vm1412_vm1, %v1411_v8 }
 0x32f   :  { %1275 = vmatprep.subr.mxu1 %v1411_v8 }
 0x330   :  { %1276 = vmatpush3.msra.mxu1 %v1474_v9 }
 0x331   :  { %1277 = vmatprep.subr.mxu1 %v1411_v8 }
 0x332   :  { %1278 = vmatpush3.msra.mxu1 %v1481_v10 }
 0x333   :  { %1279 = vmatprep.subr.mxu1 %v1411_v8 }
 0x334   :  { %1280 = vmatpush3.msra.mxu1 %v1490_v11 }
 0x335   :  { %1295 = vmatprep.subr.mxu1 %v1411_v8 }
 0x3ed   :  { %v420_v46 = vpop.f32.mrf.mxu1 }
 0x3ee   :  { %v434_v47 = vadd.f32 %v420_v46, %v1514_v21  ;;  %v425_v50 = vrot.slane %v420_v46, 6 }
 0x3ef   :  { %v1261_v48 = vpop.f32.mrf.mxu1 }
 0x3f0   :  { %v436_v49 = vrot.slane %v434_v47, 6  ;;  %v427_v51 = vadd.f32 %v425_v50, %v1533_v29 }
 0x3f2   :  { %437 = vrot.lane.b32.xlu1 %v436_v49, %s1413_s18  ;;  %v1158_v52 = vmul.f32 -1.442695, %v427_v51 }
 0x3f4   :  { %1343 = vpow2.f32 %v1158_v52 }
 0x401   :  { %v1344_v53 = vpop.eup %1343 }
 0x402   :  { %v431_v54 = vadd.f32 1.0, %v1344_v53 }
 0x404   :  { %1345 = vrcp.f32 %v431_v54 }
 0x411   :  { %v1346_v55 = vpop.eup %1345 }
 0x412   :  { %v447_v62 = vsub.f32 1.0, %v1346_v55  ;;  %v455_v1 = vmul.f32 %v1346_v55, %v453_v61 }
 0x464   :  { %v438_v56 = vpop.permute.xlu1 %437 }
 0x465   :  { %v440_v57 = vmul.f32 %v1346_v55, %v438_v56 }
 0x467   :  { %442 = vrot.lane.b32.xlu0 %v440_v57, %s1413_s18 }
 0x4d9   :  { %v443_v58 = vpop.permute.xlu0 %442 }
 0x4da   :  { %v445_v59 = vadd.f32 %v443_v58, %v1533_v29 }
 0x4dc   :  { %1347 = vtanh.f32 %v445_v59 }
 0x4e9   :  { %v1348_v60 = vpop.eup %1347 }
 0x4ea   :  { %449 = vrot.lane.b32.xlu1 %v1348_v60, %s1414_s4 }
 0x55c   :  { %v450_v63 = vpop.permute.xlu1 %449 }
 0x55d   :  { %v452_v0 = vmul.f32 %v450_v63, %v447_v62 }
 0x55f   :  { %v1561_v2 = vadd.f32 %v455_v1, %v452_v0 }
 0x561   :  { %v464_v3 = vrot.slane %v1561_v2, 2  ;;  %v568_v28 = vrot.slane %v1561_v2, 6 }
 0x563   :  { %465 = vrot.lane.b32.xlu0 %v464_v3, %s1414_s4 }
 0x5d5   :  { %v466_v4 = vpop.permute.xlu0 %465 }
 0x5d6   :  { %1271 = vmatmul.mubr.msk.f32.vlgmr.msra.gmra.mxu0 %vm237_vm7, %v466_v4 }
 0x5d7   :  { %1285 = vmatpush3.msra.mxu0 %v1468_v7  ;;  %1292 = vmatprep.mubr.msk.f32.mxu0 %vm1412_vm1, %v1411_v8 }
 0x5d8   :  { %1286 = vmatprep.subr.mxu0 %v1411_v8 }
 0x5d9   :  { %1287 = vmatpush3.msra.mxu0 %v1474_v9 }
 0x5da   :  { %1288 = vmatprep.subr.mxu0 %v1411_v8 }
 0x5db   :  { %1289 = vmatpush3.msra.mxu0 %v1481_v10 }
 0x5dc   :  { %1290 = vmatprep.subr.mxu0 %v1411_v8 }
 0x5dd   :  { %1291 = vmatpush3.msra.mxu0 %v1490_v11 }
 0x5de   :  { %1306 = vmatprep.subr.mxu0 %v1411_v8 }
 0x696   :  { %v535_v5 = vpop.f32.mrf.mxu0 }
 0x697   :  { %v549_v6 = vadd.f32 %v535_v5, %v1514_v21  ;;  %v540_v14 = vrot.slane %v535_v5, 4 }
 0x698   :  { %v1272_v12 = vpop.f32.mrf.mxu0 }
 0x699   :  { %v551_v13 = vrot.slane %v549_v6, 4  ;;  %v542_v15 = vadd.f32 %v540_v14, %v1533_v29 }
 0x69b   :  { %552 = vrot.lane.b32.xlu1 %v551_v13, %s1413_s18  ;;  %v1161_v16 = vmul.f32 -1.442695, %v542_v15 }
 0x69d   :  { %1349 = vpow2.f32 %v1161_v16 }
 0x6aa   :  { %v1350_v17 = vpop.eup %1349 }
 0x6ab   :  { %v546_v18 = vadd.f32 1.0, %v1350_v17 }
 0x6ad   :  { %1351 = vrcp.f32 %v546_v18 }
 0x6ba   :  { %v1352_v19 = vpop.eup %1351 }
 0x6bb   :  { %v562_v26 = vsub.f32 1.0, %v1352_v19  ;;  %v570_v31 = vmul.f32 %v1352_v19, %v568_v28 }
 0x70d   :  { %v553_v20 = vpop.permute.xlu1 %552 }
 0x70e   :  { %v555_v22 = vmul.f32 %v1352_v19, %v553_v20 }
 0x710   :  { %557 = vrot.lane.b32.xlu0 %v555_v22, %s1413_s18 }
 0x782   :  { %v558_v23 = vpop.permute.xlu0 %557 }
 0x783   :  { %v560_v24 = vadd.f32 %v558_v23, %v1533_v29 }
 0x785   :  { %1353 = vtanh.f32 %v560_v24 }
 0x792   :  { %v1354_v25 = vpop.eup %1353 }
 0x793   :  { %564 = vrot.lane.b32.xlu1 %v1354_v25, %s1414_s4 }
 0x805   :  { %v565_v30 = vpop.permute.xlu1 %564 }
 0x806   :  { %v567_v32 = vmul.f32 %v565_v30, %v562_v26 }
 0x808   :  { %v1583_v33 = vadd.f32 %v570_v31, %v567_v32 }
 0x80a   :  { %v579_v34 = vrot.slane %v1583_v33, 4  ;;  %v683_v52 = vrot.slane %v1583_v33, 6 }
 0x80c   :  { %580 = vrot.lane.b32.xlu0 %v579_v34, %s1414_s4 }
 0x87e   :  { %v581_v35 = vpop.permute.xlu0 %580 }
 0x87f   :  { %1282 = vmatmul.mubr.msk.f32.vlgmr.msra.gmra.mxu1 %vm237_vm7, %v581_v35 }
 0x880   :  { %1296 = vmatpush3.msra.mxu1 %v1468_v7  ;;  %1303 = vmatprep.mubr.msk.f32.mxu1 %vm1412_vm1, %v1411_v8 }
 0x881   :  { %1297 = vmatprep.subr.mxu1 %v1411_v8 }
 0x882   :  { %1298 = vmatpush3.msra.mxu1 %v1474_v9 }
 0x883   :  { %1299 = vmatprep.subr.mxu1 %v1411_v8 }
 0x884   :  { %1300 = vmatpush3.msra.mxu1 %v1481_v10 }
 0x885   :  { %1301 = vmatprep.subr.mxu1 %v1411_v8 }
 0x886   :  { %1302 = vmatpush3.msra.mxu1 %v1490_v11 }
 0x887   :  { %1317 = vmatprep.subr.mxu1 %v1411_v8 }
 0x93f   :  { %v650_v36 = vpop.f32.mrf.mxu1 }
 0x940   :  { %v664_v37 = vadd.f32 %v650_v36, %v1514_v21  ;;  %v655_v40 = vrot.slane %v650_v36, 2 }
 0x941   :  { %v1283_v38 = vpop.f32.mrf.mxu1 }
 0x942   :  { %v666_v39 = vrot.slane %v664_v37, 2  ;;  %v657_v41 = vadd.f32 %v655_v40, %v1533_v29 }
 0x944   :  { %667 = vrot.lane.b32.xlu1 %v666_v39, %s1413_s18  ;;  %v1164_v42 = vmul.f32 -1.442695, %v657_v41 }
 0x946   :  { %1355 = vpow2.f32 %v1164_v42 }
 0x953   :  { %v1356_v43 = vpop.eup %1355 }
 0x954   :  { %v661_v44 = vadd.f32 1.0, %v1356_v43 }
 0x956   :  { %1357 = vrcp.f32 %v661_v44 }
 0x963   :  { %v1358_v45 = vpop.eup %1357 }
 0x964   :  { %v677_v51 = vsub.f32 1.0, %v1358_v45  ;;  %v685_v54 = vmul.f32 %v1358_v45, %v683_v52 }
 0x9b6   :  { %v668_v46 = vpop.permute.xlu1 %667 }
 0x9b7   :  { %v670_v47 = vmul.f32 %v1358_v45, %v668_v46 }
 0x9b9   :  { %672 = vrot.lane.b32.xlu0 %v670_v47, %s1413_s18 }
 0xa2b   :  { %v673_v48 = vpop.permute.xlu0 %672 }
 0xa2c   :  { %v675_v49 = vadd.f32 %v673_v48, %v1533_v29 }
 0xa2e   :  { %1359 = vtanh.f32 %v675_v49 }
 0xa3b   :  { %v1360_v50 = vpop.eup %1359 }
 0xa3c   :  { %679 = vrot.lane.b32.xlu1 %v1360_v50, %s1414_s4 }
 0xaae   :  { %v680_v53 = vpop.permute.xlu1 %679 }
 0xaaf   :  { %v682_v55 = vmul.f32 %v680_v53, %v677_v51 }
 0xab1   :  { %v1605_v56 = vadd.f32 %v685_v54, %v682_v55 }
 0xab3   :  { %v694_v57 = vrot.slane %v1605_v56, 6 }
 0xab5   :  { %695 = vrot.lane.b32.xlu0 %v694_v57, %s1414_s4 }
 0xb27   :  { %v696_v58 = vpop.permute.xlu0 %695 }
 0xb28   :  { %1293 = vmatmul.mubr.msk.f32.vlgmr.msra.gmra.mxu0 %vm237_vm7, %v696_v58 }
 0xb29   :  { %1307 = vmatpush3.msra.mxu0 %v1468_v7  ;;  %1314 = vmatprep.mubr.msk.f32.mxu0 %vm1412_vm1, %v1411_v8 }
 0xb2a   :  { %1308 = vmatprep.subr.mxu0 %v1411_v8 }
 0xb2b   :  { %1309 = vmatpush3.msra.mxu0 %v1474_v9 }
 0xb2c   :  { %1310 = vmatprep.subr.mxu0 %v1411_v8 }
 0xb2d   :  { %1311 = vmatpush3.msra.mxu0 %v1481_v10 }
 0xb2e   :  { %1312 = vmatprep.subr.mxu0 %v1411_v8 }
 0xb2f   :  { %1313 = vmatpush3.msra.mxu0 %v1490_v11 }
 0xbe8   :  { %v765_v29 = vpop.f32.mrf.mxu0 }
 0xbe9   :  { %v776_v59 = vadd.f32 %v765_v29, %v1514_v21  ;;  %v769_v61 = vadd.f32 %v765_v29, %v1531_v27 }
 0xbea   :  { %v1294_v60 = vpop.f32.mrf.mxu0 }
 0xbeb   :  { %778 = vrot.lane.b32.xlu1 %v776_v59, %s1413_s18  ;;  %v1167_v62 = vmul.f32 -1.442695, %v769_v61 }
 0xbed   :  { %1361 = vpow2.f32 %v1167_v62 }
 0xbfa   :  { %v1362_v63 = vpop.eup %1361 }
 0xbfb   :  { %v773_v0 = vadd.f32 1.0, %v1362_v63 }
 0xbfd   :  { %1363 = vrcp.f32 %v773_v0 }
 0xc0a   :  { %v1364_v1 = vpop.eup %1363 }
 0xc0b   :  { %v788_v13 = vsub.f32 1.0, %v1364_v1  ;;  %v795_v15 = vmul.f32 %v1364_v1, %v694_v57 }
 0xc5d   :  { %v779_v3 = vpop.permute.xlu1 %778 }
 0xc5e   :  { %v781_v4 = vmul.f32 %v1364_v1, %v779_v3 }
 0xc60   :  { %783 = vrot.lane.b32.xlu0 %v781_v4, %s1413_s18 }
 0xcd2   :  { %v784_v5 = vpop.permute.xlu0 %783 }
 0xcd3   :  { %v786_v6 = vadd.f32 %v784_v5, %v1531_v27 }
 0xcd5   :  { %1365 = vtanh.f32 %v786_v6 }
 0xce2   :  { %v1366_v12 = vpop.eup %1365 }
 0xce3   :  { %790 = vrot.lane.b32.xlu1 %v1366_v12, %s1414_s4 }
 0xd55   :  { %v791_v14 = vpop.permute.xlu1 %790 }
 0xd56   :  { %v793_v16 = vmul.f32 %v791_v14, %v788_v13 }
 0xd58   :  { %v796_v17 = vadd.f32 %v795_v15, %v793_v16 }
 0xd5a   :  { %798 = vrot.lane.b32.xlu0 %v796_v17, %s1414_s4  ;;  %v904_v32 = vrot.slane %v796_v17, 6 }
 0xdcc   :  { %v799_v18 = vpop.permute.xlu0 %798 }
 0xdcd   :  { %1168 = vst.msk [vmem:[%s1704_s6 + $0x8] sm:$0x3] %vm350_vm6, %v799_v18  ;;  %1304 = vmatmul.mubr.msk.f32.vlgmr.msra.gmra.mxu1 %vm237_vm7, %v799_v18 }
 0xdce   :  { %1318 = vmatpush3.msra.mxu1 %v1468_v7  ;;  %1325 = vmatprep.mubr.msk.f32.mxu1 %vm1412_vm1, %v1411_v8 }
 0xdcf   :  { %1319 = vmatprep.subr.mxu1 %v1411_v8 }
 0xdd0   :  { %1320 = vmatpush3.msra.mxu1 %v1474_v9 }
 0xdd1   :  { %1321 = vmatprep.subr.mxu1 %v1411_v8 }
 0xdd2   :  { %1322 = vmatpush3.msra.mxu1 %v1481_v10 }
 0xdd3   :  { %1323 = vmatprep.subr.mxu1 %v1411_v8 }
 0xdd4   :  { %1324 = vmatpush3.msra.mxu1 %v1490_v11 }
 0xe8d   :  { %v871_v19 = vpop.f32.mrf.mxu1 }
 0xe8e   :  { %v885_v20 = vadd.f32 %v871_v19, %v1514_v21  ;;  %v876_v23 = vrot.slane %v871_v19, 6 }
 0xe8f   :  { %v1305_v22 = vpop.f32.mrf.mxu1 }
 0xe90   :  { %v887_v7 = vrot.slane %v885_v20, 6  ;;  %v878_v24 = vadd.f32 %v876_v23, %v1531_v27 }
 0xe92   :  { %888 = vrot.lane.b32.xlu1 %v887_v7, %s1413_s18  ;;  %v1170_v25 = vmul.f32 -1.442695, %v878_v24 }
 0xe94   :  { %1367 = vpow2.f32 %v1170_v25 }
 0xea1   :  { %v1368_v9 = vpop.eup %1367 }
 0xea2   :  { %v882_v26 = vadd.f32 1.0, %v1368_v9 }
 0xea4   :  { %1369 = vrcp.f32 %v882_v26 }
 0xeb1   :  { %v1370_v10 = vpop.eup %1369 }
 0xeb2   :  { %v898_v34 = vsub.f32 1.0, %v1370_v10  ;;  %v906_v37 = vmul.f32 %v1370_v10, %v904_v32 }
 0xf04   :  { %v889_v28 = vpop.permute.xlu1 %888 }
 0xf05   :  { %v891_v8 = vmul.f32 %v1370_v10, %v889_v28 }
 0xf07   :  { %893 = vrot.lane.b32.xlu0 %v891_v8, %s1413_s18 }
 0xf79   :  { %v894_v11 = vpop.permute.xlu0 %893 }
 0xf7a   :  { %v896_v30 = vadd.f32 %v894_v11, %v1531_v27 }
 0xf7c   :  { %1371 = vtanh.f32 %v896_v30 }
 0xf89   :  { %v1372_v31 = vpop.eup %1371 }
 0xf8a   :  { %900 = vrot.lane.b32.xlu1 %v1372_v31, %s1414_s4 }
 0xffc   :  { %v901_v35 = vpop.permute.xlu1 %900 }
 0xffd   :  { %v903_v36 = vmul.f32 %v901_v35, %v898_v34 }
 0xfff   :  { %v1646_v38 = vadd.f32 %v906_v37, %v903_v36 }
0x1001   :  { %v914_v39 = vrot.slane %v1646_v38, 2  ;;  %v1018_v58 = vrot.slane %v1646_v38, 6 }
0x1003   :  { %915 = vrot.lane.b32.xlu0 %v914_v39, %s1414_s4 }
0x1075   :  { %v916_v40 = vpop.permute.xlu0 %915 }
0x1076   :  { %1315 = vmatmul.mubr.msk.f32.vlgmr.msra.gmra.mxu0 %vm237_vm7, %v916_v40 }
0x1136   :  { %v985_v41 = vpop.f32.mrf.mxu0 }
0x1137   :  { %v999_v42 = vadd.f32 %v985_v41, %v1514_v21  ;;  %v990_v45 = vrot.slane %v985_v41, 4 }
0x1138   :  { %v1316_v43 = vpop.f32.mrf.mxu0 }
0x1139   :  { %v1001_v44 = vrot.slane %v999_v42, 4  ;;  %v992_v46 = vadd.f32 %v990_v45, %v1531_v27 }
0x113b   :  { %1002 = vrot.lane.b32.xlu1 %v1001_v44, %s1413_s18  ;;  %v1173_v47 = vmul.f32 -1.442695, %v992_v46 }
0x113d   :  { %1373 = vpow2.f32 %v1173_v47 }
0x114a   :  { %v1374_v48 = vpop.eup %1373 }
0x114b   :  { %v996_v49 = vadd.f32 1.0, %v1374_v48 }
0x114d   :  { %1375 = vrcp.f32 %v996_v49 }
0x115a   :  { %v1376_v50 = vpop.eup %1375 }
0x115b   :  { %v1012_v57 = vsub.f32 1.0, %v1376_v50  ;;  %v1020_v59 = vmul.f32 %v1376_v50, %v1018_v58 }
0x11ad   :  { %v1003_v51 = vpop.permute.xlu1 %1002 }
0x11ae   :  { %v1005_v52 = vmul.f32 %v1376_v50, %v1003_v51 }
0x11b0   :  { %1007 = vrot.lane.b32.xlu0 %v1005_v52, %s1413_s18 }
0x1222   :  { %v1008_v53 = vpop.permute.xlu0 %1007 }
0x1223   :  { %v1010_v54 = vadd.f32 %v1008_v53, %v1531_v27 }
0x1225   :  { %1377 = vtanh.f32 %v1010_v54 }
0x1232   :  { %v1378_v55 = vpop.eup %1377 }
0x1233   :  { %1014 = vrot.lane.b32.xlu1 %v1378_v55, %s1414_s4 }
0x12a5   :  { %v1015_v29 = vpop.permute.xlu1 %1014 }
0x12a6   :  { %v1017_v60 = vmul.f32 %v1015_v29, %v1012_v57 }
0x12a8   :  { %v1021_v61 = vadd.f32 %v1020_v59, %v1017_v60 }
0x12aa   :  { %v1028_v62 = vrot.slane %v1021_v61, 4  ;;  %v1132_v22 = vrot.slane %v1021_v61, 6 }
0x12ac   :  { %1029 = vrot.lane.b32.xlu0 %v1028_v62, %s1414_s4 }
0x131e   :  { %v1030_v63 = vpop.permute.xlu0 %1029 }
0x131f   :  { %1326 = vmatmul.mubr.msk.f32.vlgmr.msra.gmra.mxu1 %vm237_vm7, %v1030_v63 }
0x13df   :  { %v1099_v0 = vpop.f32.mrf.mxu1 }
0x13e0   :  { %v1113_v1 = vadd.f32 %v1099_v0, %v1514_v21  ;;  %v1104_v5 = vrot.slane %v1099_v0, 2 }
0x13e1   :  { %v1327_v3 = vpop.f32.mrf.mxu1 }
0x13e2   :  { %v1115_v4 = vrot.slane %v1113_v1, 2  ;;  %v1106_v6 = vadd.f32 %v1104_v5, %v1531_v27 }
0x13e4   :  { %1116 = vrot.lane.b32.xlu1 %v1115_v4, %s1413_s18  ;;  %v1176_v12 = vmul.f32 -1.442695, %v1106_v6 }
0x13e6   :  { %1379 = vpow2.f32 %v1176_v12 }
0x13f3   :  { %v1380_v13 = vpop.eup %1379 }
0x13f4   :  { %v1110_v14 = vadd.f32 1.0, %v1380_v13 }
0x13f6   :  { %1381 = vrcp.f32 %v1110_v14 }
0x1403   :  { %v1382_v15 = vpop.eup %1381 }
0x1404   :  { %v1134_v23 = vmul.f32 %v1382_v15, %v1132_v22 }
0x1456   :  { %v1117_v16 = vpop.permute.xlu1 %1116 }
0x1457   :  { %v1119_v17 = vmul.f32 %v1382_v15, %v1117_v16 }
0x1459   :  { %1121 = vrot.lane.b32.xlu0 %v1119_v17, %s1413_s18 }
0x145d   :  { %458 = vrot.lane.b32.xlu0 %v1561_v2, %s1414_s4 }
0x1461   :  { %688 = vrot.lane.b32.xlu0 %v1605_v56, %s1414_s4  ;;  %v1126_v56 = vsub.f32 1.0, %v1382_v15 }
0x1465   :  { %1023 = vrot.lane.b32.xlu0 %v1021_v61, %s1414_s4 }
0x14cb   :  { %v1122_v21 = vpop.permute.xlu0 %1121 }
0x14cc   :  { %v1124_v18 = vadd.f32 %v1122_v21, %v1531_v27 }
0x14ce   :  { %1383 = vtanh.f32 %v1124_v18 }
0x14cf   :  { %v459_v19 = vpop.permute.xlu0 %458 }
0x14d0   :  { %1159 = vst.msk [vmem:[%s1704_s6] sm:$0xc] %vm462_vm8, %v459_v19 }
0x14d3   :  { %v689_v20 = vpop.permute.xlu0 %688 }
0x14d4   :  { %1165 = vst.msk [vmem:[%s1704_s6] sm:$0xc0] %vm692_vm9, %v689_v20 }
0x14d7   :  { %v1024_v2 = vpop.permute.xlu0 %1023 }
0x14d8   :  { %1174 = vst.msk [vmem:[%s1704_s6 + $0x8] sm:$0x30] %vm577_vm10, %v1024_v2 }
0x14db   :  { %v1384_v27 = vpop.eup %1383 }
0x14dc   :  { %1128 = vrot.lane.b32.xlu1 %v1384_v27, %s1414_s4 }
0x14e0   :  { %573 = vrot.lane.b32.xlu1 %v1583_v33, %s1414_s4 }
0x14e4   :  { %909 = vrot.lane.b32.xlu1 %v1646_v38, %s1414_s4 }
0x154e   :  { %v1129_v7 = vpop.permute.xlu1 %1128 }
0x154f   :  { %v1131_v24 = vmul.f32 %v1129_v7, %v1126_v56 }
0x1551   :  { %v1135_v25 = vadd.f32 %v1134_v23, %v1131_v24 }
0x1552   :  { %v574_v9 = vpop.permute.xlu1 %573 }
0x1553   :  { %1162 = vst.msk [vmem:[%s1704_s6] sm:$0x30] %vm577_vm10, %v574_v9  ;;  %1137 = vrot.lane.b32.xlu1 %v1135_v25, %s1414_s4 }
0x1556   :  { %v910_v26 = vpop.permute.xlu1 %909 }
0x1557   :  { %1171 = vst.msk [vmem:[%s1704_s6 + $0x8] sm:$0xc] %vm462_vm8, %v910_v26 }
0x15c5   :  { %v1138_v33 = vpop.permute.xlu1 %1137 }
0x15c6   :  { %1177 = vst.msk [vmem:[%s1704_s6 + $0x8] sm:$0xc0] %vm692_vm9, %v1138_v33 }
0x15c7   :  { %1146 = vsyncpa [#allocation3], 1 }

</bundles_post_ra>
